<compile_context>
chip_gen: v7x
topology: tpu7x:2x2x1
jax: 0.10.0
libtpu: 0.0.40
codegen_flags: <defaults>
</compile_context>

<pallas_src>
import functools

import jax
import jax.numpy as jnp
from jax.experimental import pallas as pl
from jax.experimental.pallas import tpu as pltpu


SUBLANE = 8
LANE_ALIGN = 256          # MXU-friendly batch-tile alignment (v6e/v7x 2x256 MXU)


def _cdiv(a, b):
    return -(-a // b)


def _round_up(x, m):
    return _cdiv(x, m) * m


# ----------------------------------------------------------------------------
# Kernel: fused 3-layer MLP, transposed layout (features on sublanes, batch on
# lanes).  All matmuls accumulate in f32; bias add + tanh in f32 (EUP).
# ----------------------------------------------------------------------------
def actor_kernel(xT_ref, w1T_ref, b1_ref, w2T_ref, b2_ref, w3T_ref, b3_ref,
                 meanT_ref):
    cdt = w1T_ref.dtype                      # compute dtype for MXU operands
    x = xT_ref[...].astype(cdt)              # (S, tb)

    # Layer 1: h1^T = tanh(W1^T @ x^T + b1)          -> (H, tb)
    h1 = jnp.tanh(
        jnp.dot(w1T_ref[...], x, preferred_element_type=jnp.float32)
        + b1_ref[...]
    )

    # Layer 2: h2^T = tanh(W2^T @ h1^T + b2)         -> (H, tb)
    h2 = jnp.tanh(
        jnp.dot(w2T_ref[...], h1.astype(cdt), preferred_element_type=jnp.float32)
        + b2_ref[...]
    )

    # Mean head: mean^T = W3^T @ h2^T + b3           -> (Apad, tb)
    meanT_ref[...] = (
        jnp.dot(w3T_ref[...], h2.astype(cdt), preferred_element_type=jnp.float32)
        + b3_ref[...]
    )


# ----------------------------------------------------------------------------
# One-time parameter preparation (hoisted out of the per-call hot path).
# Weights are stored transposed [out_features, in_features] and zero-padded so
# padded rows/cols are inert (tanh(0 + 0) = 0, zero rows contribute nothing).
# ----------------------------------------------------------------------------
def prepare_params(params, compute_dtype=jnp.float32):
    S, H = params["w1"].shape
    A = params["w3"].shape[1]
    hpad = _round_up(H, SUBLANE)
    apad = _round_up(A, SUBLANE)
    f32 = jnp.float32

    w1T = jnp.zeros((hpad, S), compute_dtype).at[:H, :].set(
        params["w1"].T.astype(compute_dtype))
    b1 = jnp.zeros((hpad, 1), f32).at[:H, 0].set(params["b1"])
    w2T = jnp.zeros((hpad, hpad), compute_dtype).at[:H, :H].set(
        params["w2"].T.astype(compute_dtype))
    b2 = jnp.zeros((hpad, 1), f32).at[:H, 0].set(params["b2"])
    w3T = jnp.zeros((apad, hpad), compute_dtype).at[:A, :H].set(
        params["w3"].T.astype(compute_dtype))
    b3 = jnp.zeros((apad, 1), f32).at[:A, 0].set(params["b3"])

    std = jnp.exp(params["log_std"])         # batch-independent: hoisted here

    return {"w1T": w1T, "b1": b1, "w2T": w2T, "b2": b2, "w3T": w3T, "b3": b3,
            "std": std}


def _choose_batch_tiling(batch, block_batch):
    """Pick (tile, n_tiles) with tile a multiple of LANE_ALIGN."""
    n_tiles = max(_cdiv(batch, block_batch), 1)
    # v7x megacore: prefer >=2 grid tiles whenever the batch is big enough to
    # give each TensorCore at least one aligned tile of real rows.
    if n_tiles < 2 and batch >= 2 * LANE_ALIGN:
        n_tiles = 2
    tb = _round_up(_cdiv(batch, n_tiles), LANE_ALIGN)
    n_tiles = _cdiv(batch, tb)               # drop tiles made redundant by rounding
    return tb, n_tiles


# ----------------------------------------------------------------------------
# Forward pass.  `prepared` comes from prepare_params(); wrap this function in
# jax.jit so state pad/transpose, kernel, and output slice fuse.
# ----------------------------------------------------------------------------
def actor_forward(state, prepared, *, block_batch=1024):
    state = state.astype(jnp.float32)
    batch, S = state.shape
    hpad = prepared["w2T"].shape[0]
    apad = prepared["w3T"].shape[0]
    A = prepared["std"].shape[0]

    tb, n_tiles = _choose_batch_tiling(batch, block_batch)
    batch_pad = tb * n_tiles

    # Transposed, batch-padded input: (S, batch_pad).
    xT = jnp.zeros((S, batch_pad), jnp.float32).at[:, :batch].set(state.T)

    # VMEM budget (bytes): double-buffered x tile + out tile + resident weights.
    # All tiny here; the explicit limit just makes the budget visible (v7x has
    # only 64 MiB physical VMEM / 32 MiB default scoped).
    vmem_limit = 32 * 1024 * 1024

    meanT_pad = pl.pallas_call(
        actor_kernel,
        out_shape=jax.ShapeDtypeStruct((apad, batch_pad), jnp.float32),
        grid=(n_tiles,),
        in_specs=[
            # state^T tile: walks the batch (lane) axis
            pl.BlockSpec((S, tb), lambda i: (0, i)),
            # weights / biases: constant index -> fetched once, VMEM-resident
            pl.BlockSpec((hpad, S), lambda i: (0, 0)),
            pl.BlockSpec((hpad, 1), lambda i: (0, 0)),
            pl.BlockSpec((hpad, hpad), lambda i: (0, 0)),
            pl.BlockSpec((hpad, 1), lambda i: (0, 0)),
            pl.BlockSpec((apad, hpad), lambda i: (0, 0)),
            pl.BlockSpec((apad, 1), lambda i: (0, 0)),
        ],
        out_specs=pl.BlockSpec((apad, tb), lambda i: (0, i)),
        compiler_params=pltpu.CompilerParams(
            dimension_semantics=("parallel",),
            vmem_limit_bytes=vmem_limit,
        ),
    )(xT, prepared["w1T"], prepared["b1"], prepared["w2T"], prepared["b2"],
      prepared["w3T"], prepared["b3"])

    mean = meanT_pad[:A, :batch].T            # (batch, action_dim)
    return mean, prepared["std"]


# ----------------------------------------------------------------------------
# Init + pure-JAX reference
# ----------------------------------------------------------------------------
def init_params(key, state_dim, action_dim, hidden_dim=64):
    k1, k2, k3 = jax.random.split(key, 3)
    scale = 0.1
    return {
        "w1": scale * jax.random.normal(k1, (state_dim, hidden_dim), jnp.float32),
        "b1": jnp.zeros((hidden_dim,), jnp.float32),
        "w2": scale * jax.random.normal(k2, (hidden_dim, hidden_dim), jnp.float32),
        "b2": jnp.zeros((hidden_dim,), jnp.float32),
        "w3": scale * jax.random.normal(k3, (hidden_dim, action_dim), jnp.float32),
        "b3": jnp.zeros((action_dim,), jnp.float32),
        "log_std": jnp.zeros((action_dim,), jnp.float32),   # nn.Parameter(zeros)
    }


def reference_forward(state, params):
    h1 = jnp.tanh(state @ params["w1"] + params["b1"])
    h2 = jnp.tanh(h1 @ params["w2"] + params["b2"])
    mean = h2 @ params["w3"] + params["b3"]
    std = jnp.exp(params["log_std"])
    return mean, std


if __name__ == "__main__":
    key = jax.random.PRNGKey(0)
    k_params, k_state = jax.random.split(key)

    batch, state_dim, action_dim, hidden_dim = 8, 8, 4, 64

    params = init_params(k_params, state_dim, action_dim, hidden_dim)
    state = jax.random.normal(k_state, (batch, state_dim), jnp.float32)

    # One-time (per parameter update) preparation, outside the hot path.
    prepared = prepare_params(params)                 # f32; use jnp.bfloat16 on v6e/v7x

    fwd = jax.jit(functools.partial(actor_forward, block_batch=1024))
    mean, std = fwd(state, prepared)
    jax.block_until_ready((mean, std))

    ref_mean, ref_std = reference_forward(state, params)
    assert mean.shape == (batch, action_dim)
    assert std.shape == (action_dim,)
    assert jnp.allclose(mean, ref_mean, atol=1e-5, rtol=1e-5)
    assert jnp.allclose(std, ref_std, atol=1e-6, rtol=1e-6)

    print("KERNEL_OK")
</pallas_src>

<mosaic_0001>
module attributes {stable_mosaic.version = 11 : i64} {
  func.func @actor_kernel(%arg0: i32, %arg1: memref<8x256xf32, #tpu.memory_space<vmem>>, %arg2: memref<64x8xf32, #tpu.memory_space<vmem>>, %arg3: memref<64x1xf32, #tpu.memory_space<vmem>>, %arg4: memref<64x64xf32, #tpu.memory_space<vmem>>, %arg5: memref<64x1xf32, #tpu.memory_space<vmem>>, %arg6: memref<8x64xf32, #tpu.memory_space<vmem>>, %arg7: memref<8x1xf32, #tpu.memory_space<vmem>>, %arg8: memref<8x256xf32, #tpu.memory_space<vmem>>) attributes {dimension_semantics = [#tpu.dimension_semantics<parallel>], iteration_bounds = array<i64: 1>, scalar_prefetch = 0 : i64, scratch_operands = 0 : i64, tpu.core_type = #tpu.core_type<tc>, window_params = [{transform_indices = @transform_0, window_bounds = array<i64: 8, 256>}, {pipeline_mode = #tpu.pipeline_mode<synchronous>, transform_indices = @transform_1, window_bounds = array<i64: 64, 8>}, {pipeline_mode = #tpu.pipeline_mode<synchronous>, transform_indices = @transform_2, window_bounds = array<i64: 64, 1>}, {pipeline_mode = #tpu.pipeline_mode<synchronous>, transform_indices = @transform_3, window_bounds = array<i64: 64, 64>}, {pipeline_mode = #tpu.pipeline_mode<synchronous>, transform_indices = @transform_4, window_bounds = array<i64: 64, 1>}, {pipeline_mode = #tpu.pipeline_mode<synchronous>, transform_indices = @transform_5, window_bounds = array<i64: 8, 64>}, {pipeline_mode = #tpu.pipeline_mode<synchronous>, transform_indices = @transform_6, window_bounds = array<i64: 8, 1>}, {transform_indices = @transform_7, window_bounds = array<i64: 8, 256>}]} {
    %c0 = arith.constant 0 : index
    %c0_0 = arith.constant 0 : index
    %0 = vector.load %arg1[%c0, %c0_0] : memref<8x256xf32, #tpu.memory_space<vmem>>, vector<8x256xf32>
    %c0_1 = arith.constant 0 : index
    %c0_2 = arith.constant 0 : index
    %1 = vector.load %arg2[%c0_1, %c0_2] : memref<64x8xf32, #tpu.memory_space<vmem>>, vector<64x8xf32>
    %cst = arith.constant dense<0.000000e+00> : vector<64x256xf32>
    %2 = tpu.matmul %1, %0, %cst {dimension_numbers = #tpu.dot_dimension_numbers<[1], [0], [0], [1], [0, 0, 1, 1], [], []>} : vector<64x8xf32>, vector<8x256xf32>, vector<64x256xf32> -> vector<64x256xf32>
    %c0_3 = arith.constant 0 : index
    %c0_4 = arith.constant 0 : index
    %3 = vector.load %arg3[%c0_3, %c0_4] : memref<64x1xf32, #tpu.memory_space<vmem>>, vector<64x1xf32>
    %4 = vector.broadcast %3 : vector<64x1xf32> to vector<64x256xf32>
    %5 = arith.addf %2, %4 : vector<64x256xf32>
    %6 = math.tanh %5 : vector<64x256xf32>
    %c0_5 = arith.constant 0 : index
    %c0_6 = arith.constant 0 : index
    %7 = vector.load %arg4[%c0_5, %c0_6] : memref<64x64xf32, #tpu.memory_space<vmem>>, vector<64x64xf32>
    %cst_7 = arith.constant dense<0.000000e+00> : vector<64x256xf32>
    %8 = tpu.matmul %7, %6, %cst_7 {dimension_numbers = #tpu.dot_dimension_numbers<[1], [0], [0], [1], [0, 0, 1, 1], [], []>} : vector<64x64xf32>, vector<64x256xf32>, vector<64x256xf32> -> vector<64x256xf32>
    %c0_8 = arith.constant 0 : index
    %c0_9 = arith.constant 0 : index
    %9 = vector.load %arg5[%c0_8, %c0_9] : memref<64x1xf32, #tpu.memory_space<vmem>>, vector<64x1xf32>
    %10 = vector.broadcast %9 : vector<64x1xf32> to vector<64x256xf32>
    %11 = arith.addf %8, %10 : vector<64x256xf32>
    %12 = math.tanh %11 : vector<64x256xf32>
    %c0_10 = arith.constant 0 : index
    %c0_11 = arith.constant 0 : index
    %13 = vector.load %arg6[%c0_10, %c0_11] : memref<8x64xf32, #tpu.memory_space<vmem>>, vector<8x64xf32>
    %cst_12 = arith.constant dense<0.000000e+00> : vector<8x256xf32>
    %14 = tpu.matmul %13, %12, %cst_12 {dimension_numbers = #tpu.dot_dimension_numbers<[1], [0], [0], [1], [0, 0, 1, 1], [], []>} : vector<8x64xf32>, vector<64x256xf32>, vector<8x256xf32> -> vector<8x256xf32>
    %c0_13 = arith.constant 0 : index
    %c0_14 = arith.constant 0 : index
    %15 = vector.load %arg7[%c0_13, %c0_14] : memref<8x1xf32, #tpu.memory_space<vmem>>, vector<8x1xf32>
    %16 = vector.broadcast %15 : vector<8x1xf32> to vector<8x256xf32>
    %17 = arith.addf %14, %16 : vector<8x256xf32>
    %c0_15 = arith.constant 0 : index
    %c0_16 = arith.constant 0 : index
    %18 = vector.load %arg8[%c0_15, %c0_16] : memref<8x256xf32, #tpu.memory_space<vmem>>, vector<8x256xf32>
    tpu.vector_store %arg8[%c0_15, %c0_16], %17 {strides = array<i32>} : memref<8x256xf32, #tpu.memory_space<vmem>>, vector<8x256xf32>,
    return
  }
  func.func @transform_0(%arg0: i32) -> (i32, i32) {
    %c0_i32 = arith.constant 0 : i32
    %c0_i32_0 = arith.constant 0 : i32
    return %c0_i32, %arg0 : i32, i32
  }
  func.func @transform_1(%arg0: i32) -> (i32, i32) {
    %c0_i32 = arith.constant 0 : i32
    %c0_i32_0 = arith.constant 0 : i32
    %c0_i32_1 = arith.constant 0 : i32
    return %c0_i32, %c0_i32_0 : i32, i32
  }
  func.func @transform_2(%arg0: i32) -> (i32, i32) {
    %c0_i32 = arith.constant 0 : i32
    %c0_i32_0 = arith.constant 0 : i32
    %c0_i32_1 = arith.constant 0 : i32
    return %c0_i32, %c0_i32_0 : i32, i32
  }
  func.func @transform_3(%arg0: i32) -> (i32, i32) {
    %c0_i32 = arith.constant 0 : i32
    %c0_i32_0 = arith.constant 0 : i32
    %c0_i32_1 = arith.constant 0 : i32
    return %c0_i32, %c0_i32_0 : i32, i32
  }
  func.func @transform_4(%arg0: i32) -> (i32, i32) {
    %c0_i32 = arith.constant 0 : i32
    %c0_i32_0 = arith.constant 0 : i32
    %c0_i32_1 = arith.constant 0 : i32
    return %c0_i32, %c0_i32_0 : i32, i32
  }
  func.func @transform_5(%arg0: i32) -> (i32, i32) {
    %c0_i32 = arith.constant 0 : i32
    %c0_i32_0 = arith.constant 0 : i32
    %c0_i32_1 = arith.constant 0 : i32
    return %c0_i32, %c0_i32_0 : i32, i32
  }
  func.func @transform_6(%arg0: i32) -> (i32, i32) {
    %c0_i32 = arith.constant 0 : i32
    %c0_i32_0 = arith.constant 0 : i32
    %c0_i32_1 = arith.constant 0 : i32
    return %c0_i32, %c0_i32_0 : i32, i32
  }
  func.func @transform_7(%arg0: i32) -> (i32, i32) {
    %c0_i32 = arith.constant 0 : i32
    %c0_i32_0 = arith.constant 0 : i32
    return %c0_i32, %arg0 : i32, i32
  }
}

</mosaic_0001>

<bundles_post_ra>
// kernel: actor_forward.1
= control target key start
LH: loop header
LB: loop body
LE: loop exit
PB: predicated region body
PF: predicated region fallthrough
CT: control target
= control target key end

     0   :  { %v652_v2 = vmov 0.0   ;;  %vm84_vm0 = vcmask 64512   ;;  %v653_v4 = vmov 0   ;;  %vm294_vm1 = vcmask 523264   ;;  %s842_s0 = inlined_call_operand.vmem [shape: f32[8,256], index: 0, kind: input, shape index: {}]   ;;  %s843_s1 = inlined_call_operand.vmem [shape: f32[64,8], index: 1, kind: input, shape index: {}]   ;;  %s844_s2 = inlined_call_operand.vmem [shape: f32[64,1], index: 2, kind: input, shape index: {}]   ;;  %s845_s4 = inlined_call_operand.vmem [shape: f32[64,1], index: 4, kind: input, shape index: {}]   ;;  %s846_s6 = inlined_call_operand.vmem [shape: f32[8,1], index: 6, kind: input, shape index: {}]   ;;  %s847_s3 = inlined_call_operand.vmem [shape: f32[64,64], index: 3, kind: input, shape index: {}]   ;;  %s848_s5 = inlined_call_operand.vmem [shape: f32[8,64], index: 5, kind: input, shape index: {}]   ;;  %s849_s7 = inlined_call_operand.vmem [shape: f32[8,256], index: 7, kind: output, shape index: {}]  }
   0x1   :  { %v27_v0 = vld [vmem:[%s842_s0 + $0x8] sm:$0xff]  ;;  %v26_v1 = vld [vmem:[%s842_s0] sm:$0xff]  ;;  %173 = vmatprep.mubr.f32.mxu0 %v652_v2  ;;  %586 = vset.pattern.permute.xlu0 %v653_v4  ;;  %v38_v7 = vld [vmem:[%s844_s2 + $0x10] sm:$0xff] }
   0x2   :  { %v28_v3 = vld [vmem:[%s843_s1] sm:$0xff]  ;;  %109 = vmatprep.subr.mxu0 %v27_v0  ;;  %587 = vset.pattern.permute.xlu1 %v653_v4  ;;  %v29_v6 = vld [vmem:[%s843_s1 + $0x8] sm:$0xff]  ;;  %v39_v9 = vld [vmem:[%s844_s2 + $0x18] sm:$0xff] }
   0x3   :  { %110 = vmatpush1.msra.mxu0 %v26_v1  ;;  %383 = vmatprep.mubr.f32.mxu1 %v652_v2  ;;  %v36_v5 = vld [vmem:[%s844_s2] sm:$0xff]  ;;  %v37_v8 = vld [vmem:[%s844_s2 + $0x8] sm:$0xff]  ;;  %v30_v10 = vld [vmem:[%s843_s1 + $0x10] sm:$0xff] }
   0x4   :  { %535 = vmatmul.mubr.msk.f32.vlgmr.msra.gmra.mrb[0].mxu0 %vm84_vm0, %v28_v3  ;;  %46 = vperm.xlu0 %586, %v36_v5   ;;  %v40_v11 = vld [vmem:[%s844_s2 + $0x20] sm:$0xff]  ;;  %v41_v12 = vld [vmem:[%s844_s2 + $0x28] sm:$0xff]  ;;  %v31_v13 = vld [vmem:[%s843_s1 + $0x18] sm:$0xff] }
   0x5   :  { %179 = vmatprep.mubr.f32.mxu0 %v652_v2  ;;  %56 = vperm.xlu1 %587, %v38_v7   ;;  %v42_v14 = vld [vmem:[%s844_s2 + $0x30] sm:$0xff]  ;;  %v43_v15 = vld [vmem:[%s844_s2 + $0x38] sm:$0xff]  ;;  %v32_v16 = vld [vmem:[%s843_s1 + $0x20] sm:$0xff] }
   0x6   :  { %v246_v17 = vld [vmem:[%s845_s4] sm:$0xff]  ;;  %v247_v18 = vld [vmem:[%s845_s4 + $0x8] sm:$0xff]  ;;  %v248_v20 = vld [vmem:[%s845_s4 + $0x10] sm:$0xff] }
   0x7   :  { %v33_v19 = vld [vmem:[%s843_s1 + $0x28] sm:$0xff]  ;;  %v249_v21 = vld [vmem:[%s845_s4 + $0x18] sm:$0xff]  ;;  %v34_v22 = vld [vmem:[%s843_s1 + $0x30] sm:$0xff] }
   0x8   :  { %536 = vmatmul.mubr.msk.f32.gmra.mrb[2].mxu0 %vm84_vm0, %v29_v6  ;;  %51 = vperm.xlu0 %586, %v37_v8   ;;  %v250_v23 = vld [vmem:[%s845_s4 + $0x20] sm:$0xff]  ;;  %v251_v24 = vld [vmem:[%s845_s4 + $0x28] sm:$0xff]  ;;  %v35_v25 = vld [vmem:[%s843_s1 + $0x38] sm:$0xff] }
   0x9   :  { %185 = vmatprep.mubr.f32.mxu0 %v652_v2  ;;  %61 = vperm.xlu1 %587, %v39_v9   ;;  %v252_v26 = vld [vmem:[%s845_s4 + $0x30] sm:$0xff]  ;;  %v253_v27 = vld [vmem:[%s845_s4 + $0x38] sm:$0xff]  ;;  %v449_v28 = vld [vmem:[%s846_s6] sm:$0xff] }
   0xc   :  { %537 = vmatmul.mubr.msk.f32.gmra.mrb[4].mxu0 %vm84_vm0, %v30_v10  ;;  %66 = vperm.xlu0 %586, %v40_v11  }
   0xd   :  { %191 = vmatprep.mubr.f32.mxu0 %v652_v2  ;;  %71 = vperm.xlu1 %587, %v41_v12  }
  0x10   :  { %538 = vmatmul.mubr.msk.f32.gmra.mrb[6].mxu0 %vm84_vm0, %v31_v13  ;;  %76 = vperm.xlu0 %586, %v42_v14  }
  0x11   :  { %197 = vmatprep.mubr.f32.mxu0 %v652_v2  ;;  %81 = vperm.xlu1 %587, %v43_v15  }
  0x14   :  { %539 = vmatmul.mubr.msk.f32.gmra.mrb[8].mxu0 %vm84_vm0, %v32_v16  ;;  %256 = vperm.xlu0 %586, %v246_v17  }
  0x15   :  { %203 = vmatprep.mubr.f32.mxu0 %v652_v2  ;;  %261 = vperm.xlu1 %587, %v247_v18  }
  0x18   :  { %540 = vmatmul.mubr.msk.f32.gmra.mrb[10].mxu0 %vm84_vm0, %v33_v19  ;;  %266 = vperm.xlu0 %586, %v248_v20  }
  0x19   :  { %209 = vmatprep.mubr.f32.mxu0 %v652_v2  ;;  %271 = vperm.xlu1 %587, %v249_v21  }
  0x1c   :  { %541 = vmatmul.mubr.msk.f32.gmra.mrb[12].mxu0 %vm84_vm0, %v34_v22  ;;  %276 = vperm.xlu0 %586, %v250_v23  }
  0x1d   :  { %215 = vmatprep.mubr.f32.mxu0 %v652_v2  ;;  %281 = vperm.xlu1 %587, %v251_v24  }
  0x20   :  { %542 = vmatmul.mubr.msk.f32.gmra.mrb[14].mxu0 %vm84_vm0, %v35_v25  ;;  %286 = vperm.xlu0 %586, %v252_v26  }
  0x21   :  { %522 = vmatprep.mubr.f32.mxu0 %v652_v2  ;;  %291 = vperm.xlu1 %587, %v253_v27  }
  0x24   :  { %452 = vperm.xlu0 %586, %v449_v28  }
  0x83   :  { %v47_v29 = vpop.permute.xlu0 %46 }
  0x84   :  { %v57_v38 = vpop.permute.xlu1 %56 }
  0x87   :  { %v52_v34 = vpop.permute.xlu0 %51 }
  0x88   :  { %v62_v44 = vpop.permute.xlu1 %61 }
  0x8b   :  { %v67_v51 = vpop.permute.xlu0 %66 }
  0x8c   :  { %v72_v60 = vpop.permute.xlu1 %71 }
  0x8f   :  { %v77_v4 = vpop.permute.xlu0 %76 }
  0x90   :  { %v82_v13 = vpop.permute.xlu1 %81 }
  0xd7   :  { %v175_v30 = vpop.f32.mrb[0].mxu0 }
  0xd8   :  { %v176_v31 = vadd.f32 %v175_v30, %v47_v29  ;;  %v177_v32 = vpop.f32.mrb[1].mxu0  ;;  %v238_v30 = vld [vmem:[%s847_s3] sm:$0xff] }
  0xd9   :  { %v178_v33 = vadd.f32 %v177_v32, %v47_v29  ;;  %v240_v32 = vld [vmem:[%s847_s3 + $0x10] sm:$0xff] }
  0xda   :  { %588 = vtanh.f32 %v176_v31  ;;  %v239_v31 = vld [vmem:[%s847_s3 + $0x8] sm:$0xff] }
  0xdb   :  { %v181_v35 = vpop.f32.mrb[2].mxu0  ;;  %590 = vtanh.f32 %v178_v33  ;;  %v241_v33 = vld [vmem:[%s847_s3 + $0x18] sm:$0xff] }
  0xdc   :  { %v182_v36 = vadd.f32 %v181_v35, %v52_v34  ;;  %v183_v37 = vpop.f32.mrb[3].mxu0  ;;  %v243_v35 = vld [vmem:[%s847_s3 + $0x28] sm:$0xff] }
  0xdd   :  { %v184_v39 = vadd.f32 %v183_v37, %v52_v34  ;;  %v242_v34 = vld [vmem:[%s847_s3 + $0x20] sm:$0xff]  ;;  %v245_v37 = vld [vmem:[%s847_s3 + $0x38] sm:$0xff] }
  0xde   :  { %592 = vtanh.f32 %v182_v36  ;;  %v244_v36 = vld [vmem:[%s847_s3 + $0x30] sm:$0xff] }
  0xdf   :  { %594 = vtanh.f32 %v184_v39  ;;  %v187_v40 = vpop.f32.mrb[4].mxu0 }
  0xe0   :  { %v188_v41 = vadd.f32 %v187_v40, %v57_v38  ;;  %v189_v42 = vpop.f32.mrb[5].mxu0 }
  0xe1   :  { %v190_v43 = vadd.f32 %v189_v42, %v57_v38  ;;  %v257_v38 = vpop.permute.xlu0 %256 }
  0xe2   :  { %596 = vtanh.f32 %v188_v41 }
  0xe3   :  { %v193_v45 = vpop.f32.mrb[6].mxu0  ;;  %598 = vtanh.f32 %v190_v43  ;;  %v262_v43 = vpop.permute.xlu1 %261 }
  0xe4   :  { %v194_v46 = vadd.f32 %v193_v45, %v62_v44  ;;  %v195_v47 = vpop.f32.mrb[7].mxu0  ;;  %v589_v49 = vpop.eup %588 }
  0xe5   :  { %v196_v48 = vadd.f32 %v195_v47, %v62_v44  ;;  %v591_v50 = vpop.eup %590 }
  0xe6   :  { %600 = vtanh.f32 %v194_v46 }
  0xe7   :  { %602 = vtanh.f32 %v196_v48  ;;  %v199_v52 = vpop.f32.mrb[8].mxu0 }
  0xe8   :  { %v593_v53 = vpop.eup %592  ;;  %v200_v54 = vadd.f32 %v199_v52, %v67_v51  ;;  %v201_v55 = vpop.f32.mrb[9].mxu0 }
  0xe9   :  { %v595_v56 = vpop.eup %594  ;;  %v202_v57 = vadd.f32 %v201_v55, %v67_v51  ;;  %v554_v58 = vpack.c.bf16 %v593_v53, %v589_v49  ;;  %v272_v52 = vpop.permute.xlu1 %271 }
  0xea   :  { %v552_v59 = vpack.c.bf16 %v595_v56, %v591_v50  ;;  %604 = vtanh.f32 %v200_v54 }
  0xeb   :  { %v205_v61 = vpop.f32.mrb[10].mxu0  ;;  %606 = vtanh.f32 %v202_v57 }
  0xec   :  { %v206_v62 = vadd.f32 %v205_v61, %v72_v60  ;;  %v207_v63 = vpop.f32.mrb[11].mxu0  ;;  %553 = vmatprep.subr.bf16.mxu1 %v552_v59  ;;  %v597_v1 = vpop.eup %596 }
  0xed   :  { %v208_v0 = vadd.f32 %v207_v63, %v72_v60  ;;  %555 = vmatpush1.bf16.msra.mxu1 %v554_v58  ;;  %v599_v3 = vpop.eup %598 }
  0xee   :  { %608 = vtanh.f32 %v206_v62 }
  0xef   :  { %610 = vtanh.f32 %v208_v0  ;;  %v211_v5 = vpop.f32.mrb[12].mxu0 }
  0xf0   :  { %v601_v6 = vpop.eup %600  ;;  %v212_v7 = vadd.f32 %v211_v5, %v77_v4  ;;  %v213_v8 = vpop.f32.mrb[13].mxu0 }
  0xf1   :  { %v603_v9 = vpop.eup %602  ;;  %v214_v10 = vadd.f32 %v213_v8, %v77_v4  ;;  %v558_v11 = vpack.c.bf16 %v601_v6, %v597_v1  ;;  %v282_v5 = vpop.permute.xlu1 %281 }
  0xf2   :  { %v556_v12 = vpack.c.bf16 %v603_v9, %v599_v3  ;;  %612 = vtanh.f32 %v212_v7 }
  0xf3   :  { %v217_v14 = vpop.f32.mrb[14].mxu0  ;;  %614 = vtanh.f32 %v214_v10 }
  0xf4   :  { %v218_v15 = vadd.f32 %v217_v14, %v82_v13  ;;  %v219_v16 = vpop.f32.mrb[15].mxu0  ;;  %557 = vmatprep.subr.bf16.mxu1 %v556_v12  ;;  %v605_v18 = vpop.eup %604 }
  0xf5   :  { %v220_v17 = vadd.f32 %v219_v16, %v82_v13  ;;  %559 = vmatpush1.bf16.msra.mxu1 %v558_v11  ;;  %v607_v19 = vpop.eup %606 }
  0xf6   :  { %616 = vtanh.f32 %v218_v15 }
  0xf7   :  { %618 = vtanh.f32 %v220_v17 }
  0xf8   :  { %v609_v20 = vpop.eup %608 }
  0xf9   :  { %v611_v21 = vpop.eup %610  ;;  %v562_v22 = vpack.c.bf16 %v609_v20, %v605_v18 }
  0xfa   :  { %v560_v23 = vpack.c.bf16 %v611_v21, %v607_v19  ;;  %v292_v21 = vpop.permute.xlu1 %291 }
  0xfc   :  { %561 = vmatprep.subr.bf16.mxu1 %v560_v23  ;;  %v613_v24 = vpop.eup %612 }
  0xfd   :  { %563 = vmatpush1.bf16.msra.mxu1 %v562_v22  ;;  %v615_v25 = vpop.eup %614 }
 0x100   :  { %v617_v26 = vpop.eup %616 }
 0x101   :  { %v619_v27 = vpop.eup %618  ;;  %v566_v28 = vpack.c.bf16 %v617_v26, %v613_v24 }
 0x102   :  { %v564_v29 = vpack.c.bf16 %v619_v27, %v615_v25 }
 0x104   :  { %565 = vmatprep.subr.bf16.mxu1 %v564_v29 }
 0x105   :  { %567 = vmatpush1.bf16.msra.mxu1 %v566_v28 }
 0x108   :  { %543 = vmatmul.mubr.msk.f32.vlgmr.msra.gmra.mrb[0].mxu1 %vm294_vm1, %v238_v30 }
 0x109   :  { %389 = vmatprep.mubr.f32.mxu1 %v652_v2 }
 0x10c   :  { %544 = vmatmul.mubr.msk.f32.gmra.mrb[2].mxu1 %vm294_vm1, %v239_v31 }
 0x10d   :  { %395 = vmatprep.mubr.f32.mxu1 %v652_v2 }
 0x110   :  { %545 = vmatmul.mubr.msk.f32.gmra.mrb[4].mxu1 %vm294_vm1, %v240_v32 }
 0x111   :  { %401 = vmatprep.mubr.f32.mxu1 %v652_v2 }
 0x114   :  { %546 = vmatmul.mubr.msk.f32.gmra.mrb[6].mxu1 %vm294_vm1, %v241_v33 }
 0x115   :  { %407 = vmatprep.mubr.f32.mxu1 %v652_v2 }
 0x118   :  { %547 = vmatmul.mubr.msk.f32.gmra.mrb[8].mxu1 %vm294_vm1, %v242_v34 }
 0x119   :  { %413 = vmatprep.mubr.f32.mxu1 %v652_v2 }
 0x11c   :  { %548 = vmatmul.mubr.msk.f32.gmra.mrb[10].mxu1 %vm294_vm1, %v243_v35 }
 0x11d   :  { %419 = vmatprep.mubr.f32.mxu1 %v652_v2 }
 0x120   :  { %549 = vmatmul.mubr.msk.f32.gmra.mrb[12].mxu1 %vm294_vm1, %v244_v36 }
 0x121   :  { %425 = vmatprep.mubr.f32.mxu1 %v652_v2  ;;  %v267_v2 = vpop.permute.xlu0 %266 }
 0x124   :  { %550 = vmatmul.mubr.msk.f32.gmra.mrb[14].mxu1 %vm294_vm1, %v245_v37 }
 0x125   :  { %v277_v59 = vpop.permute.xlu0 %276 }
 0x129   :  { %v287_v12 = vpop.permute.xlu0 %286 }
 0x1db   :  { %v385_v39 = vpop.f32.mrb[0].mxu1 }
 0x1dc   :  { %v386_v40 = vadd.f32 %v385_v39, %v257_v38  ;;  %v387_v41 = vpop.f32.mrb[1].mxu1  ;;  %v453_v39 = vpop.permute.xlu0 %452 }
 0x1dd   :  { %v388_v42 = vadd.f32 %v387_v41, %v257_v38  ;;  %v448_v38 = vld [vmem:[%s848_s5] sm:$0xff] }
 0x1de   :  { %620 = vtanh.f32 %v386_v40 }
 0x1df   :  { %v391_v44 = vpop.f32.mrb[2].mxu1  ;;  %622 = vtanh.f32 %v388_v42 }
 0x1e0   :  { %v392_v45 = vadd.f32 %v391_v44, %v262_v43  ;;  %v393_v46 = vpop.f32.mrb[3].mxu1 }
 0x1e1   :  { %v394_v47 = vadd.f32 %v393_v46, %v262_v43 }
 0x1e2   :  { %624 = vtanh.f32 %v392_v45 }
 0x1e3   :  { %626 = vtanh.f32 %v394_v47  ;;  %v397_v48 = vpop.f32.mrb[4].mxu1 }
 0x1e4   :  { %v398_v49 = vadd.f32 %v397_v48, %v267_v2  ;;  %v399_v50 = vpop.f32.mrb[5].mxu1 }
 0x1e5   :  { %v400_v51 = vadd.f32 %v399_v50, %v267_v2 }
 0x1e6   :  { %628 = vtanh.f32 %v398_v49 }
 0x1e7   :  { %v403_v53 = vpop.f32.mrb[6].mxu1  ;;  %630 = vtanh.f32 %v400_v51 }
 0x1e8   :  { %v404_v54 = vadd.f32 %v403_v53, %v272_v52  ;;  %v405_v55 = vpop.f32.mrb[7].mxu1  ;;  %v621_v57 = vpop.eup %620 }
 0x1e9   :  { %v406_v56 = vadd.f32 %v405_v55, %v272_v52  ;;  %v623_v58 = vpop.eup %622 }
 0x1ea   :  { %632 = vtanh.f32 %v404_v54 }
 0x1eb   :  { %634 = vtanh.f32 %v406_v56  ;;  %v409_v60 = vpop.f32.mrb[8].mxu1 }
 0x1ec   :  { %v625_v61 = vpop.eup %624  ;;  %v410_v62 = vadd.f32 %v409_v60, %v277_v59  ;;  %v411_v63 = vpop.f32.mrb[9].mxu1 }
 0x1ed   :  { %v627_v0 = vpop.eup %626  ;;  %v412_v1 = vadd.f32 %v411_v63, %v277_v59  ;;  %v570_v3 = vpack.c.bf16 %v625_v61, %v621_v57 }
 0x1ee   :  { %v568_v4 = vpack.c.bf16 %v627_v0, %v623_v58  ;;  %636 = vtanh.f32 %v410_v62 }
 0x1ef   :  { %v415_v6 = vpop.f32.mrb[10].mxu1  ;;  %638 = vtanh.f32 %v412_v1 }
 0x1f0   :  { %v416_v7 = vadd.f32 %v415_v6, %v282_v5  ;;  %v417_v8 = vpop.f32.mrb[11].mxu1  ;;  %569 = vmatprep.subr.bf16.mxu0 %v568_v4  ;;  %v629_v10 = vpop.eup %628 }
 0x1f1   :  { %v418_v9 = vadd.f32 %v417_v8, %v282_v5  ;;  %571 = vmatpush1.bf16.msra.mxu0 %v570_v3  ;;  %v631_v11 = vpop.eup %630 }
 0x1f2   :  { %640 = vtanh.f32 %v416_v7 }
 0x1f3   :  { %642 = vtanh.f32 %v418_v9  ;;  %v421_v13 = vpop.f32.mrb[12].mxu1 }
 0x1f4   :  { %v633_v14 = vpop.eup %632  ;;  %v422_v15 = vadd.f32 %v421_v13, %v287_v12  ;;  %v423_v16 = vpop.f32.mrb[13].mxu1 }
 0x1f5   :  { %v635_v17 = vpop.eup %634  ;;  %v424_v18 = vadd.f32 %v423_v16, %v287_v12  ;;  %v574_v19 = vpack.c.bf16 %v633_v14, %v629_v10 }
 0x1f6   :  { %v572_v20 = vpack.c.bf16 %v635_v17, %v631_v11  ;;  %644 = vtanh.f32 %v422_v15 }
 0x1f7   :  { %v427_v22 = vpop.f32.mrb[14].mxu1  ;;  %646 = vtanh.f32 %v424_v18 }
 0x1f8   :  { %v428_v23 = vadd.f32 %v427_v22, %v292_v21  ;;  %v429_v24 = vpop.f32.mrb[15].mxu1  ;;  %573 = vmatprep.subr.bf16.mxu0 %v572_v20  ;;  %v637_v26 = vpop.eup %636 }
 0x1f9   :  { %v430_v25 = vadd.f32 %v429_v24, %v292_v21  ;;  %575 = vmatpush1.bf16.msra.mxu0 %v574_v19  ;;  %v639_v27 = vpop.eup %638 }
 0x1fa   :  { %648 = vtanh.f32 %v428_v23 }
 0x1fb   :  { %650 = vtanh.f32 %v430_v25 }
 0x1fc   :  { %v641_v28 = vpop.eup %640 }
 0x1fd   :  { %v643_v29 = vpop.eup %642  ;;  %v578_v30 = vpack.c.bf16 %v641_v28, %v637_v26 }
 0x1fe   :  { %v576_v31 = vpack.c.bf16 %v643_v29, %v639_v27 }
 0x200   :  { %577 = vmatprep.subr.bf16.mxu0 %v576_v31  ;;  %v645_v32 = vpop.eup %644 }
 0x201   :  { %579 = vmatpush1.bf16.msra.mxu0 %v578_v30  ;;  %v647_v33 = vpop.eup %646 }
 0x204   :  { %v649_v34 = vpop.eup %648 }
 0x205   :  { %v651_v35 = vpop.eup %650  ;;  %v582_v36 = vpack.c.bf16 %v649_v34, %v645_v32 }
 0x206   :  { %v580_v37 = vpack.c.bf16 %v651_v35, %v647_v33 }
 0x208   :  { %581 = vmatprep.subr.bf16.mxu0 %v580_v37 }
 0x209   :  { %583 = vmatpush1.bf16.msra.mxu0 %v582_v36 }
 0x20c   :  { %551 = vmatmul.mubr.msk.f32.vlgmr.msra.gmra.mrb[16].mxu0 %vm294_vm1, %v448_v38 }
 0x2df   :  { %v524_v40 = vpop.f32.mrb[16].mxu0 }
 0x2e0   :  { %v525_v41 = vadd.f32 %v524_v40, %v453_v39  ;;  %v526_v42 = vpop.f32.mrb[17].mxu0 }
 0x2e1   :  { %v527_v43 = vadd.f32 %v526_v42, %v453_v39 }
 0x2e2   :  { %529 = vst [vmem:[%s849_s7] sm:$0xff] %v525_v41 }
 0x2e3   :  { %530 = vst [vmem:[%s849_s7 + $0x8] sm:$0xff] %v527_v43 }

</bundles_post_ra>
